<compile_context>
chip_gen: v6e
topology: v6e:2x2x1
jax: 0.10.0
libtpu: 0.0.40
codegen_flags: <defaults>
</compile_context>

<pallas_src>
import math
from functools import lru_cache, partial

import jax
import jax.numpy as jnp
from jax.experimental import pallas as pl
from jax.experimental.pallas import tpu as pltpu


def _relu_kernel(x_ref, o_ref):
    # Single load -> VPU max-with-0 -> single store.
    # NOTE: for the ragged last block the out-of-bounds rows read garbage; that
    # is safe for elementwise max-with-0 (OOB writeback is masked), but would
    # NOT be safe if this kernel ever grows a row/column-wise reduction.
    o_ref[...] = jnp.maximum(x_ref[...], 0)


_LANE_CANDIDATES = (1024, 512, 256, 128)   # lane-dense widths (multiples of 128)
_FALLBACK_LANE = 1024                      # used only when padding is unavoidable


@lru_cache(maxsize=None)
def _device_block_config():
    """Per-generation (block_bytes, vmem_limit_bytes) for this memory-bound loop."""
    try:
        kind = jax.devices()[0].device_kind.lower()
    except Exception:  # pragma: no cover - defensive fallback
        kind = ""
    if "v7" in kind or "7x" in kind:
        # v7x: 3.2 TB/s HBM but only 64 MiB physical VMEM.
        # 8 MiB blocks -> ~32 MiB double-buffered in+out; raise scoped limit to 48 MiB.
        return 8 * 1024 * 1024, 48 << 20
    if "v6" in kind:
        # v6e: ~1.4 TB/s HBM, 128 MiB physical VMEM.
        return 8 * 1024 * 1024, 64 << 20
    # v5e (16 MiB default scoped VMEM) / v5p / unknown: stay small and safe.
    return 2 * 1024 * 1024, None


@partial(jax.jit, static_argnames=("inplace",))
def _spike_relu_impl(x, *, inplace=False):
    orig_shape = x.shape
    total = math.prod(orig_shape)
    if total == 0:
        return x

    # --- lane-dense 2-D view -------------------------------------------------
    # Fast path: find a lane width that divides the flat size exactly -> no pad,
    # no output slice; the reshape of a contiguous row-major array is a bitcast
    # under jit, so the DMA layout matches the producer/consumer layout.
    lane = None
    for cand in _LANE_CANDIDATES:
        if total % cand == 0:
            lane = cand
            break
    if lane is None:
        lane = _FALLBACK_LANE

    rows = -(-total // lane)
    padded_total = rows * lane

    x_flat = x.reshape(-1)
    if padded_total != total:
        # At most _FALLBACK_LANE - 1 zeros; relu(0) = 0 and the tail is sliced off.
        x_flat = jnp.pad(x_flat, (0, padded_total - total))
    x2d = x_flat.reshape(rows, lane)

    # --- block sizing ---------------------------------------------------------
    target_block_bytes, vmem_limit = _device_block_config()
    itemsize = jnp.dtype(x.dtype).itemsize
    # Rows per block: multiple of 32 so the block is sublane-aligned for
    # f32 (8), bf16 (16) and int8 (32) alike.
    tile_rows = max(32, (target_block_bytes // (lane * itemsize)) // 32 * 32)
    if rows <= tile_rows:
        tile_rows = rows  # single full-extent block; (8,128) rule is waived here

    grid = (-(-rows // tile_rows),)  # ragged last block: Pallas masks the writeback
    block = (tile_rows, lane)

    compiler_kwargs = dict(dimension_semantics=("parallel",))
    if vmem_limit is not None:
        compiler_kwargs["vmem_limit_bytes"] = vmem_limit
    # TODO(synk): if profiling on v7x shows only one TensorCore active, switch the
    # grid axis to pltpu.CORE_PARALLEL; plain "parallel" is normally sufficient.

    pallas_kwargs = {}
    if inplace:
        # Opt-in in-place variant, matching F.relu(inplace=True) intent.
        pallas_kwargs["input_output_aliases"] = {0: 0}

    y2d = pl.pallas_call(
        _relu_kernel,
        out_shape=jax.ShapeDtypeStruct((rows, lane), x.dtype),
        grid_spec=pltpu.PrefetchScalarGridSpec(
            num_scalar_prefetch=0,
            grid=grid,
            in_specs=[pl.BlockSpec(block, lambda i: (i, 0))],
            out_specs=pl.BlockSpec(block, lambda i: (i, 0)),
        ),
        compiler_params=pltpu.CompilerParams(**compiler_kwargs),
        **pallas_kwargs,
    )(x2d)

    y_flat = y2d.reshape(-1)
    if padded_total != total:
        y_flat = y_flat[:total]
    return y_flat.reshape(orig_shape)


def spike_relu(x, threshold=1.0, quantize=False, inplace=False):
    """Pallas TPU implementation of SpikeReLU.forward for plain tensors.

    `threshold` / `quantize` are kept for signature parity with the PyTorch
    module; the PyTorch forward does not use them either (plain ReLU).
    """
    # TODO(synk): SpikeTensor pass-through branch has no JAX equivalent (custom
    # tensor subclass); only the plain-tensor ReLU path is implemented.
    return _spike_relu_impl(x, inplace=inplace)


if __name__ == "__main__":
    key = jax.random.PRNGKey(0)
    # NCHW input, small shapes: batch=2, channels=4, spatial=16x16
    x = jax.random.normal(key, (2, 4, 16, 16), dtype=jnp.float32)

    y = spike_relu(x, threshold=1.0, quantize=False)
    y = jax.block_until_ready(y)

    ref = jnp.maximum(x, 0.0)
    assert y.shape == x.shape and y.dtype == x.dtype
    assert jnp.allclose(y, ref), "mismatch vs. reference ReLU"

    # opt-in in-place (input_output_aliases) path
    y_inplace = jax.block_until_ready(spike_relu(x, inplace=True))
    assert jnp.allclose(y_inplace, ref), "mismatch on in-place path"

    # misaligned / odd-size path (padding + full-extent block)
    x_odd = jax.random.normal(jax.random.PRNGKey(1), (3, 5, 7), dtype=jnp.float32)
    y_odd = jax.block_until_ready(spike_relu(x_odd))
    assert jnp.allclose(y_odd, jnp.maximum(x_odd, 0.0)), "mismatch on odd-size path"

    print("KERNEL_OK")
</pallas_src>

<mosaic_0001>
module attributes {stable_mosaic.version = 11 : i64} {
  func.func @_relu_kernel(%arg0: i32, %arg1: memref<2x1024xf32, #tpu.memory_space<vmem>>, %arg2: memref<2x1024xf32, #tpu.memory_space<vmem>>) attributes {dimension_semantics = [#tpu.dimension_semantics<parallel>], iteration_bounds = array<i64: 1>, scalar_prefetch = 0 : i64, scratch_operands = 0 : i64, tpu.core_type = #tpu.core_type<tc>, window_params = [{transform_indices = @transform_0, window_bounds = array<i64: 2, 1024>}, {transform_indices = @transform_1, window_bounds = array<i64: 2, 1024>}]} {
    %c0 = arith.constant 0 : index
    %c0_0 = arith.constant 0 : index
    %0 = vector.load %arg1[%c0, %c0_0] : memref<2x1024xf32, #tpu.memory_space<vmem>>, vector<2x1024xf32>
    %cst = arith.constant 0.000000e+00 : f32
    %1 = vector.broadcast %cst : f32 to vector<2x1024xf32>
    %2 = arith.maximumf %0, %1 : vector<2x1024xf32>
    %c0_1 = arith.constant 0 : index
    %c0_2 = arith.constant 0 : index
    %3 = vector.load %arg2[%c0_1, %c0_2] : memref<2x1024xf32, #tpu.memory_space<vmem>>, vector<2x1024xf32>
    tpu.vector_store %arg2[%c0_1, %c0_2], %2 {strides = array<i32>} : memref<2x1024xf32, #tpu.memory_space<vmem>>, vector<2x1024xf32>,
    return
  }
  func.func @transform_0(%arg0: i32) -> (i32, i32) {
    %c0_i32 = arith.constant 0 : i32
    %c0_i32_0 = arith.constant 0 : i32
    return %arg0, %c0_i32 : i32, i32
  }
  func.func @transform_1(%arg0: i32) -> (i32, i32) {
    %c0_i32 = arith.constant 0 : i32
    %c0_i32_0 = arith.constant 0 : i32
    return %arg0, %c0_i32 : i32, i32
  }
}

</mosaic_0001>

<bundles_post_ra>
// kernel: _spike_relu_impl.1
= control target key start
LH: loop header
LB: loop body
LE: loop exit
PB: predicated region body
PF: predicated region fallthrough
CT: control target
= control target key end

     0   :  { %s40_s0 = inlined_call_operand.vmem [shape: f32[2,1024], index: 0, kind: input, shape index: {}]   ;;  %s41_s1 = inlined_call_operand.vmem [shape: f32[2,1024], index: 1, kind: output, shape index: {}]  }
   0x1   :  { %v8_v0 = vld [vmem:[%s40_s0] sm:$0xff]  ;;  %v9_v1 = vld [vmem:[%s40_s0 + $0x8] sm:$0xff] }
   0x2   :  { %v10_v2 = vmax.f32 %v8_v0, 0.0  ;;  %v11_v3 = vmax.f32 %v9_v1, 0.0 }
   0x4   :  { %12 = vst [vmem:[%s41_s1] sm:$0xff] %v10_v2  ;;  %13 = vst [vmem:[%s41_s1 + $0x8] sm:$0xff] %v11_v3 }

</bundles_post_ra>
